<compile_context>
chip_gen: v6e
topology: v6e:2x2x1
jax: 0.10.0
libtpu: 0.0.40
codegen_flags: <defaults>
</compile_context>

<pallas_src>
import jax
import jax.numpy as jnp
from jax import lax
from jax.experimental import pallas as pl
from jax.experimental.pallas import tpu as pltpu


# ----------------------------------------------------------------------------
# 1. Row-tiled matmul + bias — builds the projected embedding table
#    proj = emb @ [W_ih_f | W_ih_b] + [b_f | b_b]   (V, 8H), lane-dense output.
# ----------------------------------------------------------------------------
def _matmul_bias_kernel(x_ref, w_ref, b_ref, o_ref):
    o_ref[...] = (jnp.dot(x_ref[...], w_ref[...],
                          preferred_element_type=jnp.float32)
                  + b_ref[...]).astype(o_ref.dtype)


def matmul_bias(x, w, b, tm=512):
    """x: (M, K), w: (K, N), b: (1, N)  ->  (M, N) f32."""
    M, K = x.shape
    N = w.shape[1]
    tm = min(tm, M)   # v7x: derive tm from the 64 MiB VMEM budget when scaling
    return pl.pallas_call(
        _matmul_bias_kernel,
        out_shape=jax.ShapeDtypeStruct((M, N), jnp.float32),
        grid_spec=pltpu.PrefetchScalarGridSpec(
            num_scalar_prefetch=0,
            grid=(pl.cdiv(M, tm),),
            in_specs=[pl.BlockSpec((tm, K), lambda i: (i, 0)),
                      pl.BlockSpec((K, N), lambda i: (0, 0)),
                      pl.BlockSpec((1, N), lambda i: (0, 0))],
            out_specs=pl.BlockSpec((tm, N), lambda i: (i, 0)),
        ),
        compiler_params=pltpu.CompilerParams(
            dimension_semantics=("parallel",)),
    )(x, w, b)


# ----------------------------------------------------------------------------
# 2. Fused bidirectional LSTM recurrence.
#    grid = (2,) over directions ("parallel" -> v7x's 2 TensorCores); the whole
#    time loop runs inside the kernel with h/c carried in VMEM scratch and the
#    per-token gate pre-activations gathered from the VMEM-resident projected
#    table via SMEM-prefetched token ids.
# ----------------------------------------------------------------------------
def _bilstm_kernel(ids_ref, proj_ref, whh_ref, out_ref, h_sc, c_sc):
    # ids_ref : SMEM (S*B,) int32, time-major token ids (ids[t*B + b]).
    # proj_ref: VMEM (V, 4H)  — this direction's projected table (x@W_ih^T + b).
    # whh_ref : VMEM (H, 4H)  — this direction's W_hh^T.
    # out_ref : VMEM (S, B, H) hidden states for this direction.
    d = pl.program_id(0)                         # 0 = forward, 1 = backward
    S, B, H = out_ref.shape

    h_sc[...] = jnp.zeros_like(h_sc)
    c_sc[...] = jnp.zeros_like(c_sc)
    whh = whh_ref[...]                           # (H, 4H) kept in vregs

    def step(i, carry):
        t = jnp.where(d == 0, i, S - 1 - i)      # backward direction runs reversed
        # Gather this timestep's gate pre-activations for every batch row
        # straight from the VMEM-resident projected table (no HBM round trip).
        # TODO(synk): for large B use a single vectorized/DMA gather instead of
        # the unrolled per-row loads below.
        xg = jnp.concatenate(
            [proj_ref[pl.ds(ids_ref[t * B + b], 1), :] for b in range(B)],
            axis=0)                                              # (B, 4H)
        gates = xg + jnp.dot(h_sc[...], whh,
                             preferred_element_type=jnp.float32)  # (B, 4H)
        i_g = jax.nn.sigmoid(gates[:, 0 * H:1 * H])
        f_g = jax.nn.sigmoid(gates[:, 1 * H:2 * H])
        g_g = jnp.tanh(gates[:, 2 * H:3 * H])
        o_g = jax.nn.sigmoid(gates[:, 3 * H:4 * H])
        c_new = f_g * c_sc[...] + i_g * g_g
        h_new = o_g * jnp.tanh(c_new)
        c_sc[...] = c_new
        h_sc[...] = h_new
        out_ref[t] = h_new                       # dynamic store along the S axis
        return carry

    # Short fixed trip count -> unroll for LLO scheduling visibility.
    lax.fori_loop(0, S, step, 0, unroll=True)


def bilstm_recurrence(ids, proj, w_hh, *, S, B):
    """ids: (S*B,) int32 time-major; proj: (V, 8H); w_hh: (2, H, 4H).
    Returns h: (2, S, B, H)  (direction 0 = forward, 1 = backward)."""
    V = proj.shape[0]
    H = w_hh.shape[1]
    G = 4 * H
    return pl.pallas_call(
        _bilstm_kernel,
        out_shape=jax.ShapeDtypeStruct((2, S, B, H), jnp.float32),
        grid_spec=pltpu.PrefetchScalarGridSpec(
            num_scalar_prefetch=1,
            grid=(2,),                                           # direction axis
            in_specs=[
                # per-direction column half of the projected table (V, 4H)
                pl.BlockSpec((V, G), lambda d, ids: (0, d)),
                # per-direction W_hh^T (leading dim squeezed away)
                pl.BlockSpec((None, H, G), lambda d, ids: (d, 0, 0)),
            ],
            out_specs=pl.BlockSpec((None, S, B, H),
                                   lambda d, ids: (d, 0, 0, 0)),
            scratch_shapes=[pltpu.VMEM((B, H), jnp.float32),     # h_t
                            pltpu.VMEM((B, H), jnp.float32)],    # c_t
        ),
        compiler_params=pltpu.CompilerParams(
            dimension_semantics=("parallel",)),   # independent directions
    )(ids, proj, w_hh)


# ----------------------------------------------------------------------------
# 3. Fused head: linear -> ELU -> linear, consuming the stacked per-direction
#    hidden states (no concat HBM trip); output padded to 128 lanes (unmasked
#    stores) and sliced back in the wrapper.
# ----------------------------------------------------------------------------
def _head_kernel(h_ref, w1_ref, b1_ref, w2_ref, b2_ref, o_ref):
    H = h_ref.shape[2]
    z = (jnp.dot(h_ref[0], w1_ref[:H, :], preferred_element_type=jnp.float32)
         + jnp.dot(h_ref[1], w1_ref[H:, :], preferred_element_type=jnp.float32)
         + b1_ref[...])
    # ELU(alpha=1); clamp the exp argument so the discarded branch can't overflow.
    z = jnp.where(z > 0, z, jnp.exp(jnp.minimum(z, 0.0)) - 1.0)
    o_ref[...] = (jnp.dot(z, w2_ref[...], preferred_element_type=jnp.float32)
                  + b2_ref[...]).astype(o_ref.dtype)


def mlp_head(h2, w1, b1, w2, b2, tm=256):
    """h2: (2, N, H) stacked direction outputs -> logits (N, O)."""
    _, N, H = h2.shape
    L = w1.shape[1]
    O = w2.shape[1]
    Opad = pl.cdiv(O, 128) * 128                   # lane-dense output
    w2p = jnp.zeros((L, Opad), jnp.float32).at[:, :O].set(w2)
    b2p = jnp.zeros((1, Opad), jnp.float32).at[0, :O].set(b2)
    tm = min(tm, N)                                # v7x: size from 64 MiB VMEM
    out = pl.pallas_call(
        _head_kernel,
        out_shape=jax.ShapeDtypeStruct((N, Opad), jnp.float32),
        grid_spec=pltpu.PrefetchScalarGridSpec(
            num_scalar_prefetch=0,
            grid=(pl.cdiv(N, tm),),
            in_specs=[pl.BlockSpec((2, tm, H), lambda i: (0, i, 0)),
                      pl.BlockSpec((2 * H, L), lambda i: (0, 0)),
                      pl.BlockSpec((1, L), lambda i: (0, 0)),
                      pl.BlockSpec((L, Opad), lambda i: (0, 0)),
                      pl.BlockSpec((1, Opad), lambda i: (0, 0))],
            out_specs=pl.BlockSpec((tm, Opad), lambda i: (i, 0)),
        ),
        compiler_params=pltpu.CompilerParams(
            dimension_semantics=("parallel",)),
    )(h2, w1, b1[None, :], w2p, b2p)
    return out[:, :O]


# ----------------------------------------------------------------------------
# Full BiLSTM1 forward (inference).
# ----------------------------------------------------------------------------
def bilstm1_forward(tokens, p):
    B, S = tokens.shape
    H = p["w_hh_f"].shape[0]

    # Projected embedding table for BOTH directions (biases folded in).
    w_ih = jnp.concatenate([p["w_ih_f"], p["w_ih_b"]], axis=1)     # (E, 8H)
    b_ih = jnp.concatenate([p["b_f"], p["b_b"]])[None, :]          # (1, 8H)
    proj = matmul_bias(p["emb"], w_ih, b_ih)                       # (V, 8H)

    # Time-major flattened ids: ids[t*B + b] == tokens[b, t].
    ids = tokens.T.reshape(-1).astype(jnp.int32)                   # (S*B,)

    w_hh = jnp.stack([p["w_hh_f"], p["w_hh_b"]], axis=0)           # (2, H, 4H)
    h = bilstm_recurrence(ids, proj, w_hh, S=S, B=B)               # (2, S, B, H)

    # Dropout is identity in inference.
    # TODO(synk): training-mode dropout via pltpu.prng_seed / stateful_bernoulli.

    y = mlp_head(h.reshape(2, S * B, H),
                 p["w1"], p["b1"], p["w2"], p["b2"])               # (S*B, O)
    return y.reshape(S, B, -1).transpose(1, 0, 2)                  # (B, S, O)


# ----------------------------------------------------------------------------
# Pure-JAX reference (same math as PyTorch BiLSTM1.forward, eval mode).
# ----------------------------------------------------------------------------
def bilstm1_reference(tokens, p):
    B, S = tokens.shape
    H = p["w_hh_f"].shape[0]
    e = p["emb"][tokens]                                           # (B, S, E)

    def run_dir(w_ih, w_hh, b, reverse):
        h = jnp.zeros((B, H), jnp.float32)
        c = jnp.zeros((B, H), jnp.float32)
        outs = [None] * S
        order = range(S - 1, -1, -1) if reverse else range(S)
        for t in order:
            g = e[:, t, :] @ w_ih + h @ w_hh + b
            i_g = jax.nn.sigmoid(g[:, 0 * H:1 * H])
            f_g = jax.nn.sigmoid(g[:, 1 * H:2 * H])
            g_g = jnp.tanh(g[:, 2 * H:3 * H])
            o_g = jax.nn.sigmoid(g[:, 3 * H:4 * H])
            c = f_g * c + i_g * g_g
            h = o_g * jnp.tanh(c)
            outs[t] = h
        return jnp.stack(outs, axis=1)                             # (B, S, H)

    h_f = run_dir(p["w_ih_f"], p["w_hh_f"], p["b_f"], False)
    h_b = run_dir(p["w_ih_b"], p["w_hh_b"], p["b_b"], True)
    h = jnp.concatenate([h_f, h_b], axis=-1)                       # (B, S, 2H)
    z = h @ p["w1"] + p["b1"]
    z = jnp.where(z > 0, z, jnp.exp(jnp.minimum(z, 0.0)) - 1.0)
    return z @ p["w2"] + p["b2"]


def init_params(key, V, E, H, L, O):
    ks = jax.random.split(key, 11)
    s = 0.1
    return {
        # PyTorch shapes, stored pre-transposed for row-major matmuls:
        "emb":    jax.random.normal(ks[0], (V, E), jnp.float32) * s,
        "w_ih_f": jax.random.normal(ks[1], (E, 4 * H), jnp.float32) * s,  # W_ih^T
        "w_hh_f": jax.random.normal(ks[2], (H, 4 * H), jnp.float32) * s,  # W_hh^T
        "b_f":    jax.random.normal(ks[3], (4 * H,), jnp.float32) * s,    # b_ih+b_hh
        "w_ih_b": jax.random.normal(ks[4], (E, 4 * H), jnp.float32) * s,
        "w_hh_b": jax.random.normal(ks[5], (H, 4 * H), jnp.float32) * s,
        "b_b":    jax.random.normal(ks[6], (4 * H,), jnp.float32) * s,
        "w1":     jax.random.normal(ks[7], (2 * H, L), jnp.float32) * s,  # linear^T
        "b1":     jax.random.normal(ks[8], (L,), jnp.float32) * s,
        "w2":     jax.random.normal(ks[9], (L, O), jnp.float32) * s,      # out^T
        "b2":     jax.random.normal(ks[10], (O,), jnp.float32) * s,
    }


if __name__ == "__main__":
    # Small shapes: vocab=50, emb=16, hidden=32 (4H = 128 lanes), linear=64,
    # out=8, batch=2, seq=8; dropout_prob irrelevant in inference.
    V, E, H, L, O = 50, 16, 32, 64, 8
    B, S = 2, 8

    key = jax.random.PRNGKey(0)
    k_tok, k_par = jax.random.split(key)
    tokens = jax.random.randint(k_tok, (B, S), 0, V, dtype=jnp.int32)
    params = init_params(k_par, V, E, H, L, O)

    out = bilstm1_forward(tokens, params)
    out = jax.block_until_ready(out)
    assert out.shape == (B, S, O)

    ref = bilstm1_reference(tokens, params)
    assert jnp.allclose(out, ref, atol=1e-4, rtol=1e-4), "mismatch vs reference"

    print("KERNEL_OK")
</pallas_src>

<mosaic_0001>
module attributes {stable_mosaic.version = 11 : i64} {
  func.func @_matmul_bias_kernel(%arg0: i32, %arg1: memref<50x16xf32, #tpu.memory_space<vmem>>, %arg2: memref<16x256xf32, #tpu.memory_space<vmem>>, %arg3: memref<1x256xf32, #tpu.memory_space<vmem>>, %arg4: memref<50x256xf32, #tpu.memory_space<vmem>>) attributes {dimension_semantics = [#tpu.dimension_semantics<parallel>], iteration_bounds = array<i64: 1>, scalar_prefetch = 0 : i64, scratch_operands = 0 : i64, tpu.core_type = #tpu.core_type<tc>, window_params = [{transform_indices = @transform_0, window_bounds = array<i64: 50, 16>}, {pipeline_mode = #tpu.pipeline_mode<synchronous>, transform_indices = @transform_1, window_bounds = array<i64: 16, 256>}, {pipeline_mode = #tpu.pipeline_mode<synchronous>, transform_indices = @transform_2, window_bounds = array<i64: 1, 256>}, {transform_indices = @transform_3, window_bounds = array<i64: 50, 256>}]} {
    %c0 = arith.constant 0 : index
    %c0_0 = arith.constant 0 : index
    %0 = vector.load %arg1[%c0, %c0_0] : memref<50x16xf32, #tpu.memory_space<vmem>>, vector<50x16xf32>
    %c0_1 = arith.constant 0 : index
    %c0_2 = arith.constant 0 : index
    %1 = vector.load %arg2[%c0_1, %c0_2] : memref<16x256xf32, #tpu.memory_space<vmem>>, vector<16x256xf32>
    %cst = arith.constant dense<0.000000e+00> : vector<50x256xf32>
    %2 = tpu.matmul %0, %1, %cst {dimension_numbers = #tpu.dot_dimension_numbers<[1], [0], [0], [1], [0, 0, 1, 1], [], []>} : vector<50x16xf32>, vector<16x256xf32>, vector<50x256xf32> -> vector<50x256xf32>
    %c0_3 = arith.constant 0 : index
    %c0_4 = arith.constant 0 : index
    %3 = vector.load %arg3[%c0_3, %c0_4] : memref<1x256xf32, #tpu.memory_space<vmem>>, vector<1x256xf32>
    %4 = vector.broadcast %3 : vector<1x256xf32> to vector<50x256xf32>
    %5 = arith.addf %2, %4 : vector<50x256xf32>
    %c0_5 = arith.constant 0 : index
    %c0_6 = arith.constant 0 : index
    %6 = vector.load %arg4[%c0_5, %c0_6] : memref<50x256xf32, #tpu.memory_space<vmem>>, vector<50x256xf32>
    tpu.vector_store %arg4[%c0_5, %c0_6], %5 {strides = array<i32>} : memref<50x256xf32, #tpu.memory_space<vmem>>, vector<50x256xf32>,
    return
  }
  func.func @transform_0(%arg0: i32) -> (i32, i32) {
    %c0_i32 = arith.constant 0 : i32
    %c0_i32_0 = arith.constant 0 : i32
    return %arg0, %c0_i32 : i32, i32
  }
  func.func @transform_1(%arg0: i32) -> (i32, i32) {
    %c0_i32 = arith.constant 0 : i32
    %c0_i32_0 = arith.constant 0 : i32
    %c0_i32_1 = arith.constant 0 : i32
    return %c0_i32, %c0_i32_0 : i32, i32
  }
  func.func @transform_2(%arg0: i32) -> (i32, i32) {
    %c0_i32 = arith.constant 0 : i32
    %c0_i32_0 = arith.constant 0 : i32
    %c0_i32_1 = arith.constant 0 : i32
    return %c0_i32, %c0_i32_0 : i32, i32
  }
  func.func @transform_3(%arg0: i32) -> (i32, i32) {
    %c0_i32 = arith.constant 0 : i32
    %c0_i32_0 = arith.constant 0 : i32
    return %arg0, %c0_i32 : i32, i32
  }
}

</mosaic_0001>

<bundles_post_ra>
// kernel: tpu_custom_call.1
= control target key start
LH: loop header
LB: loop body
LE: loop exit
PB: predicated region body
PF: predicated region fallthrough
CT: control target
= control target key end

     0   :  { %vm38_vm0 = vcmask 130048   ;;  %v234_v5 = vmov 0.0   ;;  %s304_s0 = inlined_call_operand.vmem [shape: f32[50,16], index: 0, kind: input, shape index: {}]   ;;  %s305_s1 = inlined_call_operand.vmem [shape: f32[16,256], index: 1, kind: input, shape index: {}]   ;;  %s306_s2 = inlined_call_operand.vmem [shape: f32[1,256], index: 2, kind: input, shape index: {}]   ;;  %s307_s3 = inlined_call_operand.hbm [shape: f32[50,256], index: 3, kind: output, shape index: {}]  }
   0x1   :  { %v25_v0 = vld [vmem:[%s305_s1 + $0x18] sm:$0xff]  ;;  %v24_v1 = vld [vmem:[%s305_s1 + $0x10] sm:$0xff]  ;;  %v23_v2 = vld [vmem:[%s305_s1 + $0x8] sm:$0xff]  ;;  %124 = vmatprep.mubr.f32.mxu0 %v234_v5 }
   0x2   :  { %88 = vmatprep.subr.mxu0 %v25_v0  ;;  %204 = vmatprep.subr.mxu1 %v25_v0  ;;  %v22_v3 = vld [vmem:[%s305_s1] sm:$0xff] }
   0x3   :  { %89 = vmatpush1.msra.mxu0 %v24_v1  ;;  %206 = vmatpush1.msra.mxu1 %v24_v1  ;;  %v15_v4 = vld [vmem:[%s304_s0] sm:$0xff] }
   0x4   :  { %90 = vmatprep.subr.mxu0 %v23_v2  ;;  %205 = vmatprep.subr.mxu1 %v23_v2  ;;  %v19_v6 = vld [vmem:[%s304_s0 + $0x20] sm:$0xff] }
   0x5   :  { %91 = vmatpush1.msra.mxu0 %v22_v3 }
   0x6   :  { %8 = vsyncpa [#allocation3], 0  ;;  %197 = vmatmul.mubr.msk.f32.vlgmr.msra.gmra.mxu0 %vm38_vm0, %v15_v4  ;;  %207 = vmatpush1.msra.mxu1 %v22_v3  ;;  %v16_v7 = vld [vmem:[%s304_s0 + $0x8] sm:$0xff]  ;;  %v17_v9 = vld [vmem:[%s304_s0 + $0x10] sm:$0xff]  ;;  %v28_v12 = vlaneseq }
   0x7   :  { %148 = vmatprep.mubr.f32.mxu1 %v234_v5  ;;  %130 = vmatprep.mubr.f32.mxu0 %v234_v5  ;;  %v20_v8 = vld [vmem:[%s304_s0 + $0x28] sm:$0xff]  ;;  %v21_v10 = vld [vmem:[%s304_s0 + $0x30] sm:$0x3]  ;;  %v18_v11 = vld [vmem:[%s304_s0 + $0x18] sm:$0xff]  ;;  %s235_s0 = smov [#allocation2]  }
   0x8   :  { %201 = vmatmul.mubr.msk.f32.vlgmr.msra.gmra.mxu1 %vm38_vm0, %v19_v6  ;;  %v29_v13 = vshrl.u32 %v28_v12, 7  ;;  %v26_v15 = vld [vmem:[%s306_s2] sm:$0x3]  ;;  %s186_s2 = sshll.u32 %s235_s0, 4  ;;  %s187_s2 = int_to_ptr.vmem [resolvable:$true] %s186_s2 }
   0x9   :  { %154 = vmatprep.mubr.f32.mxu1 %v234_v5  ;;  %s212_s8 = scalar_lea.vmem %s187_s2, 1792  ;;  %p217_p1 = scmp.lt.s32.totalorder %s187_s2, %s187_s2 }
   0xa   :  { %198 = vmatmul.mubr.msk.f32.gmra.mxu0 %vm38_vm0, %v16_v7  ;;  %v30_v14 = vsub.s32 0, %v29_v13  ;;  %v34_v16 = vsub.s32 1, %v29_v13  ;;  %p213_p0 = scmp.ne.s32.totalorder %s187_s2, %s212_s8  ;;  %p218_p2 = scmp.lt.s32.totalorder %s212_s8, %s212_s8 }
   0xb   :  { %136 = vmatprep.mubr.f32.mxu0 %v234_v5 }
   0xc   :  { %202 = vmatmul.mubr.msk.f32.gmra.mxu1 %vm38_vm0, %v20_v8  ;;  %v31_v17 = vrot.slane %v26_v15, %v30_v14  ;;  %v35_v18 = vrot.slane %v26_v15, %v34_v16  ;;  %p219_p3 = por %p218_p2, %p217_p1 }
   0xd   :  { %160 = vmatprep.mubr.f32.mxu1 %v234_v5 }
   0xe   :  { %199 = vmatmul.mubr.msk.f32.gmra.mxu0 %vm38_vm0, %v17_v9  ;;  %p220_p4 = pnand %p219_p3, %p213_p0 }
   0xf   :  { %142 = vmatprep.mubr.f32.mxu0 %v234_v5 }
  0x10   :  { %203 = vmatmul.mubr.msk.f32.gmra.mxu1 %vm38_vm0, %v21_v10 }
  0x12   :  { %200 = vmatmul.mubr.msk.f32.gmra.mxu0 %vm38_vm0, %v18_v11 }
  0xc6   :  { %v126_v19 = vpop.f32.mrf.mxu0 }
  0xc7   :  { %v127_v20 = vadd.f32 %v126_v19, %v31_v17 }
  0xc8   :  { %v128_v21 = vpop.f32.mrf.mxu0  ;;  %v150_v22 = vpop.f32.mrf.mxu1 }
  0xc9   :  { %167 = vst [vmem:[#allocation2] sm:$0xff] %v127_v20  ;;  %v129_v23 = vadd.f32 %v128_v21, %v35_v18  ;;  %v151_v24 = vadd.f32 %v150_v22, %v31_v17 }
  0xca   :  { %v132_v25 = vpop.f32.mrf.mxu0  ;;  %v152_v26 = vpop.f32.mrf.mxu1 }
  0xcb   :  { %168 = vst [vmem:[#allocation2 + $0x8] sm:$0xff] %v129_v23  ;;  %175 = vst [vmem:[#allocation2 + $0x40] sm:$0xff] %v151_v24  ;;  %v133_v27 = vadd.f32 %v132_v25, %v31_v17  ;;  %v153_v28 = vadd.f32 %v152_v26, %v35_v18 }
  0xcc   :  { %v134_v29 = vpop.f32.mrf.mxu0  ;;  %v156_v30 = vpop.f32.mrf.mxu1 }
  0xcd   :  { %169 = vst [vmem:[#allocation2 + $0x10] sm:$0xff] %v133_v27  ;;  %176 = vst [vmem:[#allocation2 + $0x48] sm:$0xff] %v153_v28  ;;  %v135_v31 = vadd.f32 %v134_v29, %v35_v18  ;;  %v157_v32 = vadd.f32 %v156_v30, %v31_v17 }
  0xce   :  { %v138_v33 = vpop.f32.mrf.mxu0  ;;  %v158_v34 = vpop.f32.mrf.mxu1 }
  0xcf   :  { %170 = vst [vmem:[#allocation2 + $0x18] sm:$0xff] %v135_v31  ;;  %177 = vst [vmem:[#allocation2 + $0x50] sm:$0xff] %v157_v32  ;;  %v139_v35 = vadd.f32 %v138_v33, %v31_v17  ;;  %v159_v36 = vadd.f32 %v158_v34, %v35_v18 }
  0xd0   :  { %v140_v37 = vpop.f32.mrf.mxu0  ;;  %v162_v38 = vpop.f32.mrf.mxu1 }
  0xd1   :  { %171 = vst [vmem:[#allocation2 + $0x20] sm:$0xff] %v139_v35  ;;  %178 = vst [vmem:[#allocation2 + $0x58] sm:$0xff] %v159_v36  ;;  %v141_v39 = vadd.f32 %v140_v37, %v35_v18  ;;  %v163_v40 = vadd.f32 %v162_v38, %v31_v17 }
  0xd2   :  { %v144_v41 = vpop.f32.mrf.mxu0  ;;  %v164_v42 = vpop.f32.mrf.mxu1 }
  0xd3   :  { %172 = vst [vmem:[#allocation2 + $0x28] sm:$0xff] %v141_v39  ;;  %179 = vst [vmem:[#allocation2 + $0x60] sm:$0x3] %v163_v40  ;;  %v145_v43 = vadd.f32 %v144_v41, %v31_v17  ;;  %v165_v44 = vadd.f32 %v164_v42, %v35_v18 }
  0xd4   :  { %v146_v45 = vpop.f32.mrf.mxu0 }
  0xd5   :  { %173 = vst [vmem:[#allocation2 + $0x30] sm:$0xff] %v145_v43  ;;  %180 = vst [vmem:[#allocation2 + $0x68] sm:$0x3] %v165_v44  ;;  %v147_v46 = vadd.f32 %v146_v45, %v35_v18 }
  0xd7   :  { %174 = vst [vmem:[#allocation2 + $0x38] sm:$0xff] %v147_v46 }
  0xd8   :  { %223 = shalt.err (!%p220_p4)
}
  0xd9   :  { %s236_s9 = smov 256   ;;  %s237_s10 = smov 16  }
  0xda   :  { %192 = dma.vmem_to_hbm [thread:$0]  %s187_s2, 1792, %s307_s3, [#allocation3], %s236_s9, %s236_s9, %s237_s10  }
  0xdb   :  { %232 = dma.done.wait [#allocation3], 1792  }
  0xdc   :  { %233 = vsyncadd [#allocation3], 4294965504 }
  0xdd   :  { %196 = vsyncpa [#allocation3], 1 }

</bundles_post_ra>
